<compile_context>
chip_gen: v6e
topology: v6e:2x2x1
jax: 0.10.0
libtpu: 0.0.40
codegen_flags: <defaults>
</compile_context>

<pallas_src>
import jax
import jax.numpy as jnp
from jax.experimental import pallas as pl
from jax.experimental.pallas import tpu as pltpu


def _tgrow_kernel(x_ref, w_ref, o_ref):
    # x_ref: (C, T) pixel columns, w_ref: (OC, C), o_ref: (OC, T).
    # Channel mix as a single MXU matmul. The pixel (lane) axis is purely
    # parallel, so padded columns in a partial last tile never contaminate
    # valid output columns.
    o_ref[...] = jnp.dot(
        w_ref[...], x_ref[...], preferred_element_type=jnp.float32
    ).astype(o_ref.dtype)


def tgrow_forward(x, weight, stride, *, tile_hw=16384):
    """Pallas implementation of TGrow.forward.

    Args:
      x:      (NT, C, H, W) float32, NCHW (PyTorch convention).
      weight: (OC, C) float32, OC = C * stride (Conv2d 1x1 weight with the
              trailing (1, 1) spatial dims squeezed out).
      stride: temporal growth factor.
      tile_hw: pixel-tile width (clamped / rounded to a multiple of 128).

    Returns:
      (NT * stride, C, H, W) float32.
    """
    NT, C, H, W = x.shape
    OC = C * stride
    assert weight.shape == (OC, C), weight.shape

    HW = H * W
    # Free row-major reshape: NCHW -> (NT, C, H*W); pixels land on lanes.
    x3 = x.reshape(NT, C, HW)

    # Pick the pixel-tile size: one big lane-dense block per image when it
    # fits, otherwise 128-multiple tiles with a Pallas-masked partial last
    # tile (no single-giant-block fallback, bounded double-buffered VMEM:
    # ~1.5 MiB at the default tile, fine even for v7x's 64 MiB/TC).
    if HW <= tile_hw:
        tile_hw = HW
    else:
        tile_hw = max(128, (tile_hw // 128) * 128)
    grid_hw = pl.cdiv(HW, tile_hw)

    out3 = pl.pallas_call(
        _tgrow_kernel,
        out_shape=jax.ShapeDtypeStruct((NT, OC, HW), x.dtype),
        grid_spec=pltpu.PrefetchScalarGridSpec(
            num_scalar_prefetch=0,
            grid=(NT, grid_hw),
            in_specs=[
                # (C, tile_hw) pixel block of image n (NT dim squeezed out).
                pl.BlockSpec((None, C, tile_hw), lambda n, j: (n, 0, j)),
                # Full (OC, C) weight, resident across the whole grid.
                pl.BlockSpec((OC, C), lambda n, j: (0, 0)),
            ],
            out_specs=pl.BlockSpec((None, OC, tile_hw), lambda n, j: (n, 0, j)),
        ),
        compiler_params=pltpu.CompilerParams(
            # Both axes are independent -> megacore sharding on v7x.
            dimension_semantics=("parallel", "parallel"),
        ),
    )(x3, weight)

    # Free row-major reshape: (NT, OC=stride*C, H*W) -> (NT*stride, C, H, W),
    # identical to PyTorch's x.reshape(-1, C, H, W).
    return out3.reshape(NT * stride, C, H, W)


def tgrow_reference(x, weight, stride):
    """Pure-JAX reference for the 1x1 conv + reshape."""
    NT, C, H, W = x.shape
    y = jnp.einsum("nchw,oc->nohw", x, weight)
    return y.reshape(-1, C, H, W)


if __name__ == "__main__":
    # Small shapes consistent with TGrow(n_f=4, stride=2).
    NT, C, H, W, stride = 2, 4, 16, 16, 2
    OC = C * stride

    key = jax.random.PRNGKey(0)
    kx, kw = jax.random.split(key)
    x = jax.random.normal(kx, (NT, C, H, W), dtype=jnp.float32)
    weight = jax.random.normal(kw, (OC, C), dtype=jnp.float32) * 0.1

    out = jax.block_until_ready(tgrow_forward(x, weight, stride))
    ref = tgrow_reference(x, weight, stride)
    assert out.shape == (NT * stride, C, H, W), out.shape
    assert jnp.allclose(out, ref, atol=1e-5, rtol=1e-5), float(
        jnp.max(jnp.abs(out - ref))
    )

    # Also exercise the tiled path with a partial last tile (H*W > tile_hw).
    NT2, C2, H2, W2, stride2 = 2, 4, 160, 160, 2
    OC2 = C2 * stride2
    kx2, kw2 = jax.random.split(jax.random.PRNGKey(1))
    x2 = jax.random.normal(kx2, (NT2, C2, H2, W2), dtype=jnp.float32)
    w2 = jax.random.normal(kw2, (OC2, C2), dtype=jnp.float32) * 0.1
    out2 = jax.block_until_ready(tgrow_forward(x2, w2, stride2, tile_hw=16384))
    ref2 = tgrow_reference(x2, w2, stride2)
    assert out2.shape == (NT2 * stride2, C2, H2, W2), out2.shape
    assert jnp.allclose(out2, ref2, atol=1e-4, rtol=1e-4), float(
        jnp.max(jnp.abs(out2 - ref2))
    )

    print("KERNEL_OK")
</pallas_src>

<mosaic_0001>
module attributes {stable_mosaic.version = 11 : i64} {
  func.func @_tgrow_kernel(%arg0: i32, %arg1: i32, %arg2: memref<1x4x256xf32, #tpu.memory_space<vmem>>, %arg3: memref<8x4xf32, #tpu.memory_space<vmem>>, %arg4: memref<1x8x256xf32, #tpu.memory_space<vmem>>) attributes {dimension_semantics = [#tpu.dimension_semantics<parallel>, #tpu.dimension_semantics<parallel>], iteration_bounds = array<i64: 2, 1>, scalar_prefetch = 0 : i64, scratch_operands = 0 : i64, tpu.core_type = #tpu.core_type<tc>, window_params = [{transform_indices = @transform_0, window_bounds = array<i64: 1, 4, 256>}, {pipeline_mode = #tpu.pipeline_mode<synchronous>, transform_indices = @transform_1, window_bounds = array<i64: 8, 4>}, {transform_indices = @transform_2, window_bounds = array<i64: 1, 8, 256>}]} {
    %c0 = arith.constant 0 : index
    %c0_0 = arith.constant 0 : index
    %0 = vector.load %arg3[%c0, %c0_0] : memref<8x4xf32, #tpu.memory_space<vmem>>, vector<8x4xf32>
    %c0_1 = arith.constant 0 : index
    %c0_2 = arith.constant 0 : index
    %c0_3 = arith.constant 0 : index
    %1 = vector.load %arg2[%c0_1, %c0_2, %c0_3] : memref<1x4x256xf32, #tpu.memory_space<vmem>>, vector<1x4x256xf32>
    %2 = vector.shape_cast %1 : vector<1x4x256xf32> to vector<4x256xf32>
    %cst = arith.constant dense<0.000000e+00> : vector<8x256xf32>
    %3 = tpu.matmul %0, %2, %cst {dimension_numbers = #tpu.dot_dimension_numbers<[1], [0], [0], [1], [0, 0, 1, 1], [], []>} : vector<8x4xf32>, vector<4x256xf32>, vector<8x256xf32> -> vector<8x256xf32>
    %c0_4 = arith.constant 0 : index
    %c0_5 = arith.constant 0 : index
    %c0_6 = arith.constant 0 : index
    %4 = vector.load %arg4[%c0_4, %c0_5, %c0_6] : memref<1x8x256xf32, #tpu.memory_space<vmem>>, vector<1x8x256xf32>
    %5 = vector.shape_cast %4 : vector<1x8x256xf32> to vector<8x256xf32>
    %6 = vector.shape_cast %3 : vector<8x256xf32> to vector<1x8x256xf32>
    tpu.vector_store %arg4[%c0_4, %c0_5, %c0_6], %6 {strides = array<i32>} : memref<1x8x256xf32, #tpu.memory_space<vmem>>, vector<1x8x256xf32>,
    return
  }
  func.func @transform_0(%arg0: i32, %arg1: i32) -> (i32, i32, i32) {
    %c0_i32 = arith.constant 0 : i32
    %c0_i32_0 = arith.constant 0 : i32
    return %arg0, %c0_i32, %arg1 : i32, i32, i32
  }
  func.func @transform_1(%arg0: i32, %arg1: i32) -> (i32, i32) {
    %c0_i32 = arith.constant 0 : i32
    %c0_i32_0 = arith.constant 0 : i32
    %c0_i32_1 = arith.constant 0 : i32
    return %c0_i32, %c0_i32_0 : i32, i32
  }
  func.func @transform_2(%arg0: i32, %arg1: i32) -> (i32, i32, i32) {
    %c0_i32 = arith.constant 0 : i32
    %c0_i32_0 = arith.constant 0 : i32
    return %arg0, %c0_i32, %arg1 : i32, i32, i32
  }
}

</mosaic_0001>

<bundles_post_ra>
// kernel: tpu_custom_call.1
= control target key start
LH: loop header
LB: loop body
LE: loop exit
PB: predicated region body
PF: predicated region fallthrough
CT: control target
= control target key end

     0   :  { %7 = vsyncpa [#allocation3], 0  ;;  %s723_s0 = inlined_call_operand.hbm [shape: f32[2,4,256], index: 0, kind: input, shape index: {}]   ;;  %s724_s1 = inlined_call_operand.vmem [shape: f32[8,4], index: 1, kind: input, shape index: {}]   ;;  %s725_s2 = inlined_call_operand.hbm [shape: f32[2,8,256], index: 2, kind: output, shape index: {}]  }
   0x1   :  { %9 = vsyncpa [#allocation3 + $0x1], 0 }
   0x2   :  { %10 = vsyncpa [#allocation4], 0 }
   0x3   :  { %12 = vsyncpa [#allocation4 + $0x1], 0  ;;  %s579_s9 = smov 0   ;;  %s581_s10 = smov 0  }
   0x4   :  { %s583_s11 = smov 0   ;;  %s585_s12 = smov 0  }
   0x5   :  { %s587_s13 = smov 0   ;;  %s589_s14 = smov 0  }
   0x6 LB: > { %s367_s15 = sadd.s32 4294967295, %s559_s14   ;;  %s368_s16 = sadd.s32 4294967294, %s559_s14   ;;  %s559_s14 = sphi %s589_s14, %s18_s14   ;;  %s555_s13 = sphi %s587_s13, %s737_s13   ;;  %s551_s12 = sphi %s585_s12, %s736_s12   ;;  %s547_s11 = sphi %s583_s11, %s735_s11   ;;  %s543_s10 = sphi %s581_s10, %s734_s10   ;;  %s539_s9 = sphi %s579_s9, %s733_s9  }
   0x7   : > { %s30_s17 = sadd.s32 1, %s555_s13  ;;  %s39_s18 = sadd.s32 1, %s547_s11 }
   0x8   : > { %p32_p0 = scmp.ge.s32.totalorder %s30_s17, 2  ;;  %p46_p1 = scmp.ne.s32.totalorder %s547_s11, %s543_s10 }
   0x9   : > { %p47_p2 = scmp.eq.s32.totalorder %s559_s14, 0  ;;  %p52_p3 = scmp.ne.s32.totalorder %s543_s10, %s539_s9 }
   0xa   : > { %s739_s17 = smov (%p32_p0, %s30_s17), 0  ;;  %p53_p5 = scmp.eq.s32.totalorder %s367_s15, 0 }
   0xb   : > { %p620_p4 = por %p47_p2, %p46_p1  ;;  %s34_s20 = ssub.s32 %s555_s13, %s739_s17 }
   0xc   : > { %p99_p6 = scmp.eq.s32.totalorder %s367_s15, 1  ;;  %p37_p7 = scmp.eq.s32.totalorder %s34_s20, 0 }
   0xd   : > { %p626_p8 = por %p53_p5, %p52_p3  ;;  %p105_p10 = scmp.eq.s32.totalorder %s368_s16, 1 }
   0xe   : > { %p630_p9 = por %p99_p6, %p46_p1  ;;  %p399_p13 = scmp.lt.s32.totalorder %s559_s14, 2 }
   0xf   : > { %s635_s23 = scalar_select %p37_p7, %s547_s11, %s39_s18  }
  0x10   : > { %p637_p11 = por %p105_p10, %p52_p3  ;;  %s128_s25 = sand.u32 1, %s547_s11  }
  0x11   : > { %s371_s26 = sshll.u32 %s128_s25, 3  ;;  %s385_s27 = sshll.u32 %s555_s13, 7 }
  0x12   : > { %s729_s24 = scalar_select %p637_p11, 1, 0 }
  0x13   : > { %s140_s30 = scalar_lea.hbm %s723_s0, %s385_s27  ;;  %s132_s3 = scalar_lea.vmem [#allocation2], %s371_s26 }
  0x14   : > { %s142_s4 = sshll.u32 %s132_s3, 4  ;;  %p650_p0 = pnand %p399_p13, %p620_p4  ;;  %s143_s4 = int_to_ptr.vmem [resolvable:$true] %s142_s4 }
  0x15   : > { %p374_p1 = scmp.ge.s32.totalorder %s559_s14, 1  ;;  %p147_p2 = scmp.lt.s32.totalorder %s559_s14, 3 }
  0x16   : > { %s129_s6 = scalar_lea.sflag [#allocation3], %s128_s25  ;;  %p453_p3 = pneg %p650_p0 }
  0x17   : > { %s464_s7 = scalar_lea.vmem %s143_s4, 128  ;;  %s561_s8 = smov [#allocation2]  }
  0x18   : > { %p465_p5 = scmp.ne.s32.totalorder %s143_s4, %s464_s7  ;;  %s469_s15 = sshll.u32 %s561_s8, 4  ;;  %s470_s15 = int_to_ptr.vmem [resolvable:$false] %s469_s15 }
  0x19   : > { %s471_s16 = scalar_lea.vmem %s470_s15, 256  ;;  %p472_p10 = scmp.lt.s32.totalorder %s143_s4, %s470_s15 }
  0x1a   : > { %p467_p6 = pnand %p465_p5, %p453_p3  ;;  %p473_p12 = scmp.lt.s32.totalorder %s471_s16, %s464_s7 }
  0x1c   : > { %p468_p7 = pneg %p467_p6  ;;  %p474_p4 = por %p473_p12, %p472_p10 }
  0x1e   : > { %p475_p13 = pnand %p474_p4, %p468_p7 }
  0x20   : > { %478 = shalt.err (!%p475_p13)
}
  0x21   : > { %394 = dma.hbm_to_vmem [thread:$0]  (!%p650_p0), %s140_s30, 128, %s143_s4, %s129_s6  }
  0x22   : > { %p148_p11 = pnand %p374_p1, %p147_p2 }
  0x23   : > { %s665_s18 = sand.u32 (!%p148_p11), 1, %s543_s10  }
  0x24   : > { %151 = sbr.rel (%p148_p11) target bundleno = 255 (0xff), region = 28  ;;  %s375_s19 = sshll.u32 (!%p148_p11), %s665_s18, 3 }
  0x25   : > { %s154_s20 = scalar_lea.sflag (!%p148_p11), [#allocation3], %s665_s18  ;;  %s157_s25 = scalar_lea.vmem (!%p148_p11), [#allocation2], %s375_s19 }
  0x29   : > { %530 = dma.done.wait (%p626_p8), %s154_s20, 128  }
  0x2a   : > { %532 = vsyncadd (%p626_p8), %s154_s20, 4294967168  ;;  %v562_v0 = vmov 0.0   ;;  %v181_v1 = vld [vmem:[%s157_s25] sm:$0xff]  ;;  %vm188_vm0 = vcmask 1043456   ;;  %vm184_vm1 = vcmask 31744   ;;  %s376_s28 = sshll.u32 %s665_s18, 4 }
  0x2b   : > { %257 = vmatprep.mubr.f32.mxu0 %v562_v0  ;;  %v183_v2 = vcombine.high %v181_v1, %v181_v1  ;;  %v180_v3 = vld [vmem:[%s724_s1] sm:$0xff]  ;;  %s177_s21 = scalar_lea.vmem [#allocation5], %s376_s28  ;;  %s386_s30 = sshll.u32 %s551_s12, 8 }
  0x2c   : > { %s283_s29 = sshll.u32 %s177_s21, 4  ;;  %s281_s5 = scalar_lea.hbm %s725_s2, %s386_s30  ;;  %s678_s29 = int_to_ptr.vmem [resolvable:$true] %s283_s29 }
  0x2d   : > { %377 = vmatprep.subr.msk.mxu0 %vm188_vm0, %v183_v2  ;;  %s267_s6 = scalar_lea.sflag [#allocation4], %s665_s18  ;;  %s479_s7 = scalar_lea.vmem %s678_s29, 256 }
  0x2e   : > { %378 = vmatpush1.msk.msra.mxu0 %vm188_vm0, %v181_v1  ;;  %p480_p8 = scmp.ne.s32.totalorder %s678_s29, %s479_s7  ;;  %s563_s12 = smov [#allocation5]  }
  0x2f   : > { %379 = vmatmul.mubr.msk.f32.vlgmr.msra.gmra.mxu0 %vm184_vm1, %v180_v3  ;;  %s483_s8 = sshll.u32 %s563_s12, 4  ;;  %s484_s8 = int_to_ptr.vmem [resolvable:$false] %s483_s8 }
  0x30   : > { %p481_p11 = pnand %p480_p8, %p630_p9  ;;  %s485_s15 = scalar_lea.vmem %s484_s8, 512 }
  0x31   : > { %p486_p0 = scmp.lt.s32.totalorder %s678_s29, %s484_s8  ;;  %p487_p1 = scmp.lt.s32.totalorder %s485_s15, %s479_s7 }
  0x32   : > { %p482_p12 = pneg %p481_p11 }
  0x33   : > { %p488_p2 = por %p487_p1, %p486_p0 }
  0x35   : > { %p489_p3 = pnand %p488_p2, %p482_p12 }
  0xef   : > { %v259_v4 = vpop.f32.mrf.mxu0 }
  0xf0   : > { %264 = vst [vmem:[%s177_s21] sm:$0xff] %v259_v4 }
  0xf1   : > { %v261_v5 = vpop.f32.mrf.mxu0 }
  0xf2   : > { %265 = vst [vmem:[%s177_s21 + $0x8] sm:$0xff] %v261_v5 }
  0xf3   : > { %492 = shalt.err (!%p489_p3)
}
  0xf4   : > { %s493_s16 = scalar_lea.hbm %s281_s5, 256  ;;  %s497_s20 = scalar_lea.hbm %s725_s2, 512 }
  0xf5   : > { %p494_p5 = scmp.ne.s32.totalorder %s281_s5, %s493_s16  ;;  %p498_p10 = scmp.lt.s32.totalorder %s281_s5, %s725_s2 }
  0xf6   : > { %p499_p4 = scmp.lt.s32.totalorder %s497_s20, %s493_s16 }
  0xf7   : > { %p495_p6 = pnand %p494_p5, %p630_p9 }
  0xf8   : > { %p500_p13 = por %p499_p4, %p498_p10 }
  0xf9   : > { %p496_p7 = pneg %p495_p6 }
  0xfb   : > { %p501_p8 = pnand %p500_p13, %p496_p7 }
  0xfd   : > { %504 = shalt.err (!%p501_p8)
}
  0xfe   : > { %389 = dma.vmem_to_hbm [thread:$0]  (%p630_p9), %s678_s29, 256, %s281_s5, %s267_s6  }
  0xff PF: > { %s295_s27 = sand.u32 1, %s539_s9   ;;  %p731_p11 = scmp.ne.s32.totalorder %s729_s24, 0 }
 0x100   : > { %p732_p12 = scmp.ge.s32.totalorder %s559_s14, 2  ;;  %s296_s28 = scalar_lea.sflag [#allocation4], %s295_s27 }
 0x102   : > { %p396_p0 = pnand %p732_p12, %p731_p11 }
 0x104   : > { %p397_p1 = pneg %p396_p0 }
 0x106   : > { %534 = dma.done.wait (%p397_p1), %s296_s28, 256  }
 0x107   : > { %536 = vsyncadd (%p397_p1), %s296_s28, 4294967040  ;;  %s18_s14 = sadd.s32 1, %s559_s14   ;;  %s733_s9 = smov %s543_s10 }
 0x108   : > { %p15_p2 = scmp.ge.s32.totalorder %s18_s14, 4   ;;  %s734_s10 = smov %s547_s11 }
 0x109   : > { %s735_s11 = smov %s635_s23  ;;  %s736_s12 = smov %s555_s13 }
 0x10a   : > { %s737_s13 = smov %s739_s17  ;;  %17 = sbr.rel (!%p15_p2) target bundleno = 6 (0x6), region = 73 }
 0x10f   :  { %301 = vsyncpa [#allocation3], 1 }
 0x110   :  { %303 = vsyncpa [#allocation3 + $0x1], 1 }
 0x111   :  { %304 = vsyncpa [#allocation4], 1 }
 0x112   :  { %306 = vsyncpa [#allocation4 + $0x1], 1 }

</bundles_post_ra>
